<compile_context>
chip_gen: v7x
topology: tpu7x:2x2x1
jax: 0.10.0
libtpu: 0.0.40
codegen_flags: <defaults>
</compile_context>

<pallas_src>
import functools

import numpy as np
import jax
import jax.numpy as jnp
from jax.experimental import pallas as pl
from jax.experimental.pallas import tpu as pltpu


# ----------------------------- roll sign probe --------------------------------

_ROLL_LIKE_NP = None


def _roll_matches_np():
    """Determine pltpu.roll's sign convention once with a tiny probe kernel."""
    global _ROLL_LIKE_NP
    if _ROLL_LIKE_NP is None:
        def probe(x_ref, o_ref):
            o_ref[...] = pltpu.roll(x_ref[...], shift=1, axis=1)

        x = jnp.tile(jnp.arange(128, dtype=jnp.float32)[None, :], (8, 1))
        y = pl.pallas_call(
            probe, out_shape=jax.ShapeDtypeStruct((8, 128), jnp.float32))(x)
        _ROLL_LIKE_NP = bool(jnp.array_equal(y, jnp.roll(x, 1, axis=1)))
    return _ROLL_LIKE_NP


# --------------------------------- kernel ------------------------------------

def _decoder_kernel(x_ref, w3_ref, b3_ref, w1_ref, b1_ref, o_ref, *,
                    down_t, dilations, t0, width, rolls_like_np):
    f32, bf16 = jnp.float32, jnp.bfloat16
    x = x_ref[0].astype(f32)                   # (width, LW): channels x packed time
    lw = x.shape[1]                            # fixed lane width (>= 128)

    def mm(w, a):                              # single-pass bf16 MXU, f32 accumulate
        return jnp.dot(w.astype(bf16), a.astype(bf16), preferred_element_type=f32)

    def tap_shift(a, s, t_per):
        # b[:, p] = a[:, p + s] within each packed sample of length t_per, else 0.
        # Roll on the XLU + boundary mask on the VPU: exact, no MXU work, and valid
        # lanes never read wrapped/padding data (the mask kills those positions).
        amt = ((-s) if rolls_like_np else s) % lw
        rolled = pltpu.roll(a, shift=amt, axis=1)
        t_loc = jax.lax.broadcasted_iota(jnp.int32, a.shape, 1) % t_per
        ok = jnp.logical_and(t_loc + s >= 0, t_loc + s < t_per)
        return jnp.where(ok, rolled, 0.0)

    def conv3(a, idx, dil, t_per):
        # 'same' kernel-3 dilated conv: stack kept taps on sublanes, one MXU dot.
        taps, kept = [], []
        for k in range(3):
            s = (k - 1) * dil
            if s == 0:
                taps.append(a); kept.append(k)
            elif abs(s) < t_per:
                taps.append(tap_shift(a, s, t_per)); kept.append(k)
            # else: tap only sees zero padding inside every sample -> drop it.
        xcat = taps[0] if len(taps) == 1 else jnp.concatenate(taps, axis=0)
        w = w3_ref[idx]                                   # (width, 3*width) bf16
        if len(kept) != 3:                                # keep matching columns only
            w = w[:, kept[0] * width:(kept[-1] + 1) * width]
        return mm(w, xcat) + b3_ref[idx].astype(f32)

    def upsample2(a):
        # nearest-x2 on the packed lane axis: y[:, p] = a[:, p // 2].  Exact for the
        # lanes we keep; built per use (nothing O(LW^2) stays live across the body).
        r = jax.lax.broadcasted_iota(jnp.int32, (lw, lw), 0)
        c = jax.lax.broadcasted_iota(jnp.int32, (lw, lw), 1)
        up = (r == c // 2).astype(bf16)
        return jnp.dot(a.astype(bf16), up, preferred_element_type=f32)

    relu = lambda v: jnp.maximum(v, 0.0)

    t_per = t0
    i3 = i1 = 0
    x = relu(conv3(x, i3, 1, t_per)); i3 += 1             # conv_in + ReLU
    for _ in range(down_t):
        for dil in dilations:                             # Resnet1D (reversed dils)
            h = relu(conv3(relu(x), i3, dil, t_per)); i3 += 1
            h = mm(w1_ref[i1], h) + b1_ref[i1].astype(f32); i1 += 1
            x = x + h                                     # residual (f32 on VPU)
        x = upsample2(x); t_per *= 2                      # Upsample(x2, nearest)
        x = conv3(x, i3, 1, t_per); i3 += 1               # per-stage conv
    x = relu(conv3(x, i3, 1, t_per)); i3 += 1             # conv + ReLU
    x = conv3(x, i3, 1, t_per); i3 += 1                   # conv_out (Cout zero-padded)
    o_ref[0] = x.astype(o_ref.dtype)                      # full-tile (16, LW) store


# ------------------------------- pallas wrapper --------------------------------

def _cost_estimate(g, lw, down_t, depth, width, n3, params, in_bytes, out_bytes):
    c3 = 2 * width * (3 * width) * lw
    c1 = 2 * width * width * lw
    up = 2 * width * lw * lw
    flops = g * (n3 * c3 + down_t * depth * c1 + down_t * up)
    nbytes = (in_bytes + out_bytes
              + sum(int(v.size) * v.dtype.itemsize for v in params.values()))
    return pl.CostEstimate(flops=int(flops), transcendentals=0,
                           bytes_accessed=int(nbytes))


def decoder_forward(x_ncl, params, *, input_emb_width=3, down_t=3, width=16,
                    depth=3, dilation_growth_rate=3, samples_per_block=None):
    """x_ncl: (N, output_emb_width, L) -> (N, input_emb_width, L * 2**down_t)."""
    n, c, t0 = x_ncl.shape
    t_out = t0 * (2 ** down_t)
    dilations = tuple(dilation_growth_rate ** d for d in range(depth))[::-1]

    # Lane-pack `spb` samples per block so the output slab is >= 128 lanes wide.
    if samples_per_block is None:
        spb = n
        for s in range(1, n + 1):
            if n % s == 0 and s * t_out >= 128:
                spb = s
                break
    else:
        spb = samples_per_block
    assert n % spb == 0, "batch must divide evenly into lane-packed blocks"
    g = n // spb
    lw = max(128, ((spb * t_out + 127) // 128) * 128)     # fixed lane width

    # Pack batch into lanes: (N, C, T0) -> (G, C, spb*T0), zero-pad lanes to lw.
    xp = x_ncl.reshape(g, spb, c, t0).transpose(0, 2, 1, 3).reshape(g, c, spb * t0)
    xp = jnp.pad(xp, ((0, 0), (0, 0), (0, lw - spb * t0)))

    w3, b3, w1, b1 = params["w3"], params["b3"], params["w1"], params["b1"]
    kern = functools.partial(_decoder_kernel, down_t=down_t, dilations=dilations,
                             t0=t0, width=width, rolls_like_np=_roll_matches_np())
    # Activations, masks and weights total well under 1 MiB here, so the default
    # scoped-VMEM limit is plenty; a time-tiling grid axis would only be needed at
    # much larger sequence lengths.
    out = pl.pallas_call(
        kern,
        out_shape=jax.ShapeDtypeStruct((g, width, lw), x_ncl.dtype),
        grid=(g,),
        in_specs=[
            pl.BlockSpec((1, c, lw), lambda i: (i, 0, 0)),
            pl.BlockSpec(w3.shape, lambda i: (0, 0, 0)),   # packed weights: one DMA
            pl.BlockSpec(b3.shape, lambda i: (0, 0, 0)),
            pl.BlockSpec(w1.shape, lambda i: (0, 0, 0)),
            pl.BlockSpec(b1.shape, lambda i: (0, 0, 0)),
        ],
        out_specs=pl.BlockSpec((1, width, lw), lambda i: (i, 0, 0)),
        compiler_params=pltpu.CompilerParams(dimension_semantics=("parallel",)),
        cost_estimate=_cost_estimate(
            g, lw, down_t, depth, width, w3.shape[0], params,
            in_bytes=int(xp.size) * xp.dtype.itemsize,
            out_bytes=g * width * lw * x_ncl.dtype.itemsize),
    )(xp, w3, b3, w1, b1)

    # Unpack lanes back to (N, width, T_out), keep real output channels.
    out = out[:, :, : spb * t_out]
    out = out.reshape(g, width, spb, t_out).transpose(0, 2, 1, 3)
    out = out.reshape(n, width, t_out)
    return out[:, :input_emb_width, :]


# ------------------------------- parameters -----------------------------------

def init_decoder_params(key, input_emb_width=3, output_emb_width=16, down_t=3,
                        width=16, depth=3, dilation_growth_rate=3):
    assert output_emb_width == width, "packed layout assumes uniform width"
    dilations = [dilation_growth_rate ** d for d in range(depth)][::-1]
    keys = iter(jax.random.split(key, 64))

    def conv3_init(k, cin, cout):
        kw, kb = jax.random.split(k)
        bound = 1.0 / np.sqrt(cin * 3)
        w = jax.random.uniform(kw, (cout, 3, cin), jnp.float32, -bound, bound)
        b = jax.random.uniform(kb, (cout,), jnp.float32, -bound, bound)
        if cout < width:                 # pad Cout so all k=3 convs stack uniformly
            w = jnp.pad(w, ((0, width - cout), (0, 0), (0, 0)))
            b = jnp.pad(b, (0, width - cout))
        return w.reshape(width, 3 * cin), b.reshape(width, 1)

    def conv1_init(k, cin, cout):
        kw, kb = jax.random.split(k)
        bound = 1.0 / np.sqrt(cin)
        w = jax.random.uniform(kw, (cout, cin), jnp.float32, -bound, bound)
        b = jax.random.uniform(kb, (cout,), jnp.float32, -bound, bound)
        return w, b.reshape(cout, 1)

    w3, b3, w1, b1 = [], [], [], []

    def add3(cin, cout):
        w, b = conv3_init(next(keys), cin, cout); w3.append(w); b3.append(b)

    def add1(cin, cout):
        w, b = conv1_init(next(keys), cin, cout); w1.append(w); b1.append(b)

    add3(output_emb_width, width)                      # conv_in
    for _ in range(down_t):
        for _dil in dilations:                         # ResConv1DBlock
            add3(width, width)                         #   dilated k=3
            add1(width, width)                         #   1x1
        add3(width, width)                             # conv after Upsample
    add3(width, width)                                 # conv_mid
    add3(width, input_emb_width)                       # conv_out (Cout zero-padded)

    # Weights in bf16 (single-pass MXU on v5e/v6e/v7x, half the weight DMA);
    # biases stay f32 (added on the VPU in f32).
    return {"w3": jnp.stack(w3).astype(jnp.bfloat16), "b3": jnp.stack(b3),
            "w1": jnp.stack(w1).astype(jnp.bfloat16), "b1": jnp.stack(b1)}


# --------------------------- pure-JAX reference --------------------------------

def _conv3_ref(x_ncl, w_flat, b_col, dil, cout, width):
    w = w_flat.astype(jnp.float32).reshape(width, 3, width)[:cout]
    w = w.transpose(0, 2, 1)                                        # (Cout, Cin, K)
    y = jax.lax.conv_general_dilated(
        x_ncl, w, window_strides=(1,), padding=[(dil, dil)],
        rhs_dilation=(dil,), dimension_numbers=("NCH", "OIH", "NCH"),
        precision=jax.lax.Precision.HIGHEST)
    return y + b_col[:cout].astype(jnp.float32).reshape(1, cout, 1)


def decoder_forward_ref(x_ncl, params, *, input_emb_width=3, down_t=3, width=16,
                        depth=3, dilation_growth_rate=3):
    dilations = [dilation_growth_rate ** d for d in range(depth)][::-1]
    w3, b3, w1, b1 = params["w3"], params["b3"], params["w1"], params["b1"]
    relu = jax.nn.relu
    i3, i1 = 0, 0
    x = relu(_conv3_ref(x_ncl, w3[i3], b3[i3], 1, width, width)); i3 += 1
    for _ in range(down_t):
        for dil in dilations:
            h = relu(_conv3_ref(relu(x), w3[i3], b3[i3], dil, width, width)); i3 += 1
            h = jnp.einsum("oc,ncl->nol", w1[i1].astype(jnp.float32), h,
                           precision=jax.lax.Precision.HIGHEST)
            h = h + b1[i1].reshape(1, width, 1)
            i1 += 1
            x = x + h
        x = jnp.repeat(x, 2, axis=2)                   # Upsample(x2, nearest)
        x = _conv3_ref(x, w3[i3], b3[i3], 1, width, width); i3 += 1
    x = relu(_conv3_ref(x, w3[i3], b3[i3], 1, width, width)); i3 += 1
    x = _conv3_ref(x, w3[i3], b3[i3], 1, input_emb_width, width); i3 += 1
    return x


# ----------------------------------- main --------------------------------------

if __name__ == "__main__":
    key = jax.random.PRNGKey(0)
    pkey, xkey = jax.random.split(key)
    params = init_decoder_params(pkey)

    N, C_in, L = 2, 16, 8                               # (batch, output_emb_width, seq)
    x = jax.random.normal(xkey, (N, C_in, L), jnp.float32)

    out = jax.block_until_ready(decoder_forward(x, params))
    assert out.shape == (N, 3, L * 8), out.shape        # 3 upsample stages -> 8x length

    ref = decoder_forward_ref(x, params)
    # Kernel runs every matmul as bf16 x bf16 (f32 accumulate) on the MXU while the
    # reference is f32 HIGHEST precision; shifts are exact rolls, so the only
    # divergence is per-conv bf16 operand rounding (structural bugs would be O(1)).
    np.testing.assert_allclose(np.asarray(out), np.asarray(ref), rtol=3e-2, atol=3e-2)

    print("KERNEL_OK")
</pallas_src>

<mosaic_0001>
module attributes {stable_mosaic.version = 11 : i64} {
  func.func @probe(%arg0: memref<8x128xf32, #tpu.memory_space<vmem>>, %arg1: memref<8x128xf32, #tpu.memory_space<vmem>>) attributes {dimension_semantics = [], scalar_prefetch = 0 : i64, scratch_operands = 0 : i64, tpu.core_type = #tpu.core_type<tc>} {
    %c0 = arith.constant 0 : index
    %c0_0 = arith.constant 0 : index
    %0 = vector.load %arg0[%c0, %c0_0] : memref<8x128xf32, #tpu.memory_space<vmem>>, vector<8x128xf32>
    %c1_i32 = arith.constant 1 : i32
    %1 = tpu.dynamic_rotate %0 by %c1_i32 dim 1 : vector<8x128xf32>, i32 -> vector<8x128xf32>
    %c0_1 = arith.constant 0 : index
    %c0_2 = arith.constant 0 : index
    %2 = vector.load %arg1[%c0_1, %c0_2] : memref<8x128xf32, #tpu.memory_space<vmem>>, vector<8x128xf32>
    tpu.vector_store %arg1[%c0_1, %c0_2], %1 {strides = array<i32>} : memref<8x128xf32, #tpu.memory_space<vmem>>, vector<8x128xf32>,
    return
  }
}

</mosaic_0001>

<bundles_post_ra>
// kernel: tpu_custom_call.1
= control target key start
LH: loop header
LB: loop body
LE: loop exit
PB: predicated region body
PF: predicated region fallthrough
CT: control target
= control target key end

     0   :  { %6 = vsyncpa [#allocation3], 0  ;;  %s128_s0 = inlined_call_operand.hbm [shape: f32[8,128], index: 0, kind: input, shape index: {}]   ;;  %s129_s1 = inlined_call_operand.hbm [shape: f32[8,128], index: 1, kind: output, shape index: {}]  }
   0x1   :  { %7 = vsyncpa [#allocation4], 0  ;;  %s91_s6 = smov [#allocation2]   ;;  %s43_s10 = scalar_lea.hbm %s128_s0, 128 }
   0x2   :  { %s14_s7 = sshll.u32 %s91_s6, 4  ;;  %p44_p0 = scmp.ne.s32.totalorder %s128_s0, %s43_s10  ;;  %s15_s7 = int_to_ptr.vmem [resolvable:$true] %s14_s7 }
   0x3   :  { %p47_p1 = scmp.lt.u32.totalorder %s43_s10, %s128_s0 }
   0x5   :  { %p49_p2 = pnand %p47_p1, %p44_p0 }
   0x7   :  { %52 = shalt.err (!%p49_p2)
}
   0x8   :  { %s53_s15 = scalar_lea.vmem %s15_s7, 128  ;;  %p58_p4 = scmp.lt.s32.totalorder %s15_s7, %s15_s7 }
   0x9   :  { %p54_p3 = scmp.ne.s32.totalorder %s15_s7, %s53_s15  ;;  %p59_p5 = scmp.lt.s32.totalorder %s53_s15, %s53_s15 }
   0xb   :  { %p60_p6 = por %p59_p5, %p58_p4 }
   0xd   :  { %p61_p7 = pnand %p60_p6, %p54_p3 }
   0xf   :  { %64 = shalt.err (!%p61_p7)
}
  0x10   :  { %17 = dma.hbm_to_vmem [thread:$0]  %s128_s0, 128, %s15_s7, [#allocation3]  }
  0x11   :  { %87 = dma.done.wait [#allocation3], 128  }
  0x12   :  { %88 = vsyncadd [#allocation3], 4294967168  ;;  %v21_v0 = vld [vmem:[#allocation2] sm:$0xff]  ;;  %s92_s18 = smov 1   ;;  %s93_s19 = smov [#allocation5]  }
  0x13   :  { %22 = vrot.lane.b32.xlu0 %v21_v0, %s92_s18  ;;  %s31_s20 = sshll.u32 %s93_s19, 4  ;;  %s32_s20 = int_to_ptr.vmem [resolvable:$true] %s31_s20 }
  0x14   :  { %s65_s21 = scalar_lea.vmem %s32_s20, 128  ;;  %p70_p9 = scmp.lt.s32.totalorder %s32_s20, %s32_s20 }
  0x15   :  { %p66_p8 = scmp.ne.s32.totalorder %s32_s20, %s65_s21  ;;  %p71_p10 = scmp.lt.s32.totalorder %s65_s21, %s65_s21 }
  0x17   :  { %p72_p11 = por %p71_p10, %p70_p9 }
  0x19   :  { %p73_p12 = pnand %p72_p11, %p66_p8 }
  0x85   :  { %v23_v1 = vpop.permute.xlu0 %22 }
  0x86   :  { %24 = vst [vmem:[#allocation5] sm:$0xff] %v23_v1 }
  0x87   :  { %76 = shalt.err (!%p73_p12)
}
  0x88   :  { %s77_s0 = scalar_lea.hbm %s129_s1, 128 }
  0x89   :  { %p78_p13 = scmp.ne.s32.totalorder %s129_s1, %s77_s0  ;;  %p81_p0 = scmp.lt.u32.totalorder %s77_s0, %s129_s1 }
  0x8b   :  { %p83_p1 = pnand %p81_p0, %p78_p13 }
  0x8d   :  { %86 = shalt.err (!%p83_p1)
}
  0x8e   :  { %34 = dma.vmem_to_hbm [thread:$0]  %s32_s20, 128, %s129_s1, [#allocation4]  }
  0x8f   :  { %89 = dma.done.wait [#allocation4], 128  }
  0x90   :  { %90 = vsyncadd [#allocation4], 4294967168 }
  0x91   :  { %38 = vsyncpa [#allocation3], 1 }
  0x92   :  { %39 = vsyncpa [#allocation4], 1 }

</bundles_post_ra>
